<compile_context>
chip_gen: v7x
topology: tpu7x:2x2x1
jax: 0.10.0
libtpu: 0.0.40
codegen_flags: <defaults>
</compile_context>

<pallas_src>
import math

import jax
import jax.numpy as jnp
from jax.experimental import pallas as pl
from jax.experimental.pallas import tpu as pltpu


_LANE = 128
_LANE_CAP = 2048                    # max lane width per block
_BLOCK_BYTE_CAP = 2 * 1024 * 1024   # output-block byte budget; a grid step is
                                    # 3x this (2 input halves + 1 output), so a
                                    # 2-deep pipeline stays <= 12 MiB (< v5e's
                                    # 16 MiB scoped-VMEM default).
_MIN_GRID_STEPS = 8                 # target steps for pipeline steady state /
                                    # v7x megacore split
_TINY_FALLBACK_ELEMS = 1024         # below this a kernel launch isn't worth it


def _mfm_kernel(x_ref, o_ref):
    # x_ref: (2, tr, L) VMEM tile holding both channel halves of one block.
    # o_ref: (tr, L).  Single VPU elementwise max -> strictly HBM-bandwidth
    # bound; all the work is in keeping the DMAs big and lane/sublane dense.
    o_ref[...] = jnp.maximum(x_ref[0], x_ref[1])


def _sublane_unit(itemsize):
    # Sub-32-bit dtypes pack along sublanes: a bf16 vreg is [16,128], int8 [32,128].
    return {4: 8, 2: 16, 1: 32}.get(itemsize, 8)


def _pick_lane(n, sub_unit):
    """Largest lane width L (multiple of 128, <= cap) dividing n, preferring a
    choice whose row count n // L is sublane-dense.  Returns 0 if none."""
    start = min(_LANE_CAP, (n // _LANE) * _LANE)
    cands = [L for L in range(start, _LANE - 1, -_LANE) if n % L == 0]
    for L in cands:
        if (n // L) % sub_unit == 0:
            return L
    return cands[0] if cands else 0


def _pick_rows(rows, lane, itemsize, sub_unit, batch):
    """Sublane tile height: a multiple of sub_unit dividing `rows`, within the
    byte budget, preferring a tile that leaves >= _MIN_GRID_STEPS grid steps."""
    if rows % sub_unit != 0:
        return rows                           # full-dim fallback (legal)
    cap_elems = max(_BLOCK_BYTE_CAP // (lane * itemsize), 1)
    hi = min(rows, cap_elems)
    divs = [t for t in range(sub_unit, hi + 1, sub_unit) if rows % t == 0]
    if not divs:
        return sub_unit
    good = [t for t in divs if batch * (rows // t) >= _MIN_GRID_STEPS]
    return max(good) if good else max(divs)


def max_feature_map_2d(x, max_dim=1):
    """Pallas implementation of MaxFeatureMap2D(max_dim=1) for (B, C, ...) inputs."""
    # TODO(synk): only channel-dim maxout (max_dim=1) is implemented, matching
    # the module's default / LightCNN usage.
    assert max_dim == 1, "kernel implements channel-dim maxout (max_dim=1)"
    assert x.ndim >= 2, "input must be at least (batch, channel)"
    b, c = x.shape[0], x.shape[1]
    assert c % 2 == 0, "channel dimension must be even"
    half = c // 2
    spatial = x.shape[2:]
    hw = math.prod(spatial)
    n = half * hw
    itemsize = jnp.dtype(x.dtype).itemsize
    sub_unit = _sublane_unit(itemsize)

    def _jnp_fallback():
        return jnp.max(x.reshape((b, 2, half) + spatial), axis=1)

    if b * c * hw < _TINY_FALLBACK_ELEMS:
        return _jnp_fallback()

    lane = _pick_lane(n, sub_unit)
    if lane == 0:
        # No 128-multiple lane factoring exists: keep the (half, hw) view.
        # The lane dim equals the full array dim (legal); stores are masked
        # but results are correct.
        rows, lane = half, hw
    else:
        rows = n // lane
    tr = _pick_rows(rows, lane, itemsize, sub_unit, b)

    # Safety valve: pathological shapes whose forced full-dim tile would not
    # double-buffer inside v5e's 16 MiB scoped-VMEM default.
    if 2 * 3 * tr * lane * itemsize > 14 * 1024 * 1024:
        return _jnp_fallback()

    # Free, contiguous reshape: (B, 2, R, L) with R * L == half * hw.
    x_r = x.reshape(b, 2, rows, lane)

    grid = (b, rows // tr)
    # Single input spec carrying BOTH channel halves of the block: one strided
    # DMA per step instead of two.
    in_spec = pl.BlockSpec((None, 2, tr, lane), lambda bi, ri: (bi, 0, ri, 0))
    out_spec = pl.BlockSpec((None, tr, lane), lambda bi, ri: (bi, ri, 0))

    out_flat = pl.pallas_call(
        _mfm_kernel,
        out_shape=jax.ShapeDtypeStruct((b, rows, lane), x.dtype),
        grid_spec=pltpu.PrefetchScalarGridSpec(
            num_scalar_prefetch=0,
            grid=grid,
            in_specs=[in_spec],
            out_specs=out_spec,
        ),
        compiler_params=pltpu.CompilerParams(
            dimension_semantics=("parallel", "parallel")),
    )(x_r)

    return out_flat.reshape((b, half) + spatial)


def _reference(x):
    b, c = x.shape[0], x.shape[1]
    return jnp.max(x.reshape((b, 2, c // 2) + x.shape[2:]), axis=1)


if __name__ == "__main__":
    key = jax.random.PRNGKey(0)
    k1, k2, k3 = jax.random.split(key, 3)

    # Small shape matching the module's example scale.
    x_small = jax.random.uniform(k1, (2, 4, 16, 16), dtype=jnp.float32)
    out_small = jax.block_until_ready(max_feature_map_2d(x_small))
    assert out_small.shape == (2, 2, 16, 16), out_small.shape
    assert out_small.dtype == x_small.dtype
    assert jnp.array_equal(out_small, _reference(x_small)), "small f32 mismatch"

    # Larger LightCNN-like shape: exercises the lane/sublane-dense tiled path.
    x_big = jax.random.uniform(k2, (2, 64, 80, 80), dtype=jnp.float32)
    out_big = jax.block_until_ready(max_feature_map_2d(x_big))
    assert out_big.shape == (2, 32, 80, 80), out_big.shape
    assert jnp.array_equal(out_big, _reference(x_big)), "big f32 mismatch"

    # bf16 case: exercises the dtype-dependent sublane unit (16 for bf16).
    x_bf16 = jax.random.uniform(k3, (2, 32, 32, 32), dtype=jnp.float32).astype(jnp.bfloat16)
    out_bf16 = jax.block_until_ready(max_feature_map_2d(x_bf16))
    assert out_bf16.shape == (2, 16, 32, 32), out_bf16.shape
    assert out_bf16.dtype == jnp.bfloat16
    assert jnp.array_equal(out_bf16, _reference(x_bf16)), "bf16 mismatch"

    print("KERNEL_OK")
</pallas_src>

<mosaic_0001>
module attributes {stable_mosaic.version = 11 : i64} {
  func.func @_mfm_kernel(%arg0: i32, %arg1: i32, %arg2: memref<1x2x1x512xf32, #tpu.memory_space<vmem>>, %arg3: memref<1x1x512xf32, #tpu.memory_space<vmem>>) attributes {dimension_semantics = [#tpu.dimension_semantics<parallel>, #tpu.dimension_semantics<parallel>], iteration_bounds = array<i64: 2, 1>, scalar_prefetch = 0 : i64, scratch_operands = 0 : i64, tpu.core_type = #tpu.core_type<tc>, window_params = [{transform_indices = @transform_0, window_bounds = array<i64: 1, 2, 1, 512>}, {transform_indices = @transform_1, window_bounds = array<i64: 1, 1, 512>}]} {
    %c0 = arith.constant 0 : index
    %c0_0 = arith.constant 0 : index
    %c0_1 = arith.constant 0 : index
    %c0_2 = arith.constant 0 : index
    %0 = vector.load %arg2[%c0, %c0_0, %c0_1, %c0_2] : memref<1x2x1x512xf32, #tpu.memory_space<vmem>>, vector<1x1x1x512xf32>
    %1 = vector.shape_cast %0 : vector<1x1x1x512xf32> to vector<1x512xf32>
    %c0_3 = arith.constant 0 : index
    %c1 = arith.constant 1 : index
    %c0_4 = arith.constant 0 : index
    %c0_5 = arith.constant 0 : index
    %2 = vector.load %arg2[%c0_3, %c1, %c0_4, %c0_5] : memref<1x2x1x512xf32, #tpu.memory_space<vmem>>, vector<1x1x1x512xf32>
    %3 = vector.shape_cast %2 : vector<1x1x1x512xf32> to vector<1x512xf32>
    %4 = arith.maximumf %1, %3 : vector<1x512xf32>
    %c0_6 = arith.constant 0 : index
    %c0_7 = arith.constant 0 : index
    %c0_8 = arith.constant 0 : index
    %5 = vector.load %arg3[%c0_6, %c0_7, %c0_8] : memref<1x1x512xf32, #tpu.memory_space<vmem>>, vector<1x1x512xf32>
    %6 = vector.shape_cast %5 : vector<1x1x512xf32> to vector<1x512xf32>
    %7 = vector.shape_cast %4 : vector<1x512xf32> to vector<1x1x512xf32>
    tpu.vector_store %arg3[%c0_6, %c0_7, %c0_8], %7 {strides = array<i32>} : memref<1x1x512xf32, #tpu.memory_space<vmem>>, vector<1x1x512xf32>,
    return
  }
  func.func @transform_0(%arg0: i32, %arg1: i32) -> (i32, i32, i32, i32) {
    %c0_i32 = arith.constant 0 : i32
    %c0_i32_0 = arith.constant 0 : i32
    %c0_i32_1 = arith.constant 0 : i32
    return %arg0, %c0_i32, %arg1, %c0_i32_0 : i32, i32, i32, i32
  }
  func.func @transform_1(%arg0: i32, %arg1: i32) -> (i32, i32, i32) {
    %c0_i32 = arith.constant 0 : i32
    %c0_i32_0 = arith.constant 0 : i32
    return %arg0, %arg1, %c0_i32 : i32, i32, i32
  }
}

</mosaic_0001>

<bundles_post_ra>
// kernel: tpu_custom_call.1
= control target key start
LH: loop header
LB: loop body
LE: loop exit
PB: predicated region body
PF: predicated region fallthrough
CT: control target
= control target key end

     0   :  { %6 = vsyncpa [#allocation3], 0  ;;  %s647_s0 = inlined_call_operand.hbm [shape: f32[2,2,1,512], index: 0, kind: input, shape index: {}]   ;;  %s648_s1 = inlined_call_operand.hbm [shape: f32[2,1,512], index: 1, kind: output, shape index: {}]  }
   0x1   :  { %8 = vsyncpa [#allocation3 + $0x1], 0 }
   0x2   :  { %9 = vsyncpa [#allocation4], 0 }
   0x3   :  { %11 = vsyncpa [#allocation4 + $0x1], 0  ;;  %s473_s6 = smov 0   ;;  %s475_s7 = smov 0  }
   0x4   :  { %s477_s8 = smov 0   ;;  %s479_s9 = smov 0  }
   0x5   :  { %s481_s10 = smov 0   ;;  %s483_s11 = smov 0  }
   0x6 LB: > { %s263_s12 = sadd.s32 4294967295, %s457_s11   ;;  %s264_s13 = sadd.s32 4294967294, %s457_s11   ;;  %s457_s11 = sphi %s483_s11, %s17_s11   ;;  %s453_s10 = sphi %s481_s10, %s663_s10   ;;  %s449_s9 = sphi %s479_s9, %s662_s9   ;;  %s445_s8 = sphi %s477_s8, %s661_s8   ;;  %s441_s7 = sphi %s475_s7, %s660_s7   ;;  %s437_s6 = sphi %s473_s6, %s659_s6  }
   0x7   : > { %s29_s14 = sadd.s32 1, %s453_s10  ;;  %s38_s15 = sadd.s32 1, %s445_s8 }
   0x8   : > { %p31_p0 = scmp.ge.s32.totalorder %s29_s14, 2  ;;  %p45_p1 = scmp.ne.s32.totalorder %s445_s8, %s441_s7 }
   0x9   : > { %p46_p2 = scmp.eq.s32.totalorder %s457_s11, 0  ;;  %p51_p3 = scmp.ne.s32.totalorder %s441_s7, %s437_s6 }
   0xa   : > { %s665_s14 = smov (%p31_p0, %s29_s14), 0  ;;  %p52_p5 = scmp.eq.s32.totalorder %s263_s12, 0 }
   0xb   : > { %p514_p4 = por %p46_p2, %p45_p1  ;;  %s33_s17 = ssub.s32 %s453_s10, %s665_s14 }
   0xc   : > { %p77_p6 = scmp.eq.s32.totalorder %s263_s12, 1  ;;  %p36_p7 = scmp.eq.s32.totalorder %s33_s17, 0 }
   0xd   : > { %p520_p8 = por %p52_p5, %p51_p3  ;;  %p83_p10 = scmp.eq.s32.totalorder %s264_s13, 1 }
   0xe   : > { %p524_p9 = por %p77_p6, %p45_p1  ;;  %p293_p13 = scmp.lt.s32.totalorder %s457_s11, 2 }
   0xf   : > { %s529_s20 = scalar_select %p36_p7, %s445_s8, %s38_s15  }
  0x10   : > { %s652_s19 = scalar_select %p524_p9, 1, 0 }
  0x11   : > { %p531_p11 = por %p83_p10, %p51_p3  ;;  %s103_s22 = sand.u32 1, %s445_s8  }
  0x12   : > { %s267_s23 = sshll.u32 %s103_s22, 3  ;;  %s279_s24 = sshll.u32 %s453_s10, 7 }
  0x13   : > { %s653_s21 = scalar_select %p531_p11, 1, 0 }
  0x14   : > { %s542_s27 = scalar_lea.hbm %s647_s0, %s279_s24  ;;  %s107_s28 = scalar_lea.vmem [#allocation2], %s267_s23 }
  0x15   : > { %s116_s29 = sshll.u32 %s107_s28, 4  ;;  %p548_p0 = pnand %p293_p13, %p514_p4  ;;  %s544_s29 = int_to_ptr.vmem [resolvable:$true] %s116_s29 }
  0x16   : > { %s553_s2 = scalar_lea.sflag [#allocation3], %s103_s22  ;;  %s345_s3 = scalar_lea.hbm %s542_s27, 128 }
  0x17   : > { %p346_p2 = scmp.ne.s32.totalorder %s542_s27, %s345_s3  ;;  %p347_p3 = pneg %p548_p0 }
  0x18   : > { %s350_s12 = scalar_lea.hbm %s647_s0, 256  ;;  %p351_p4 = scmp.lt.u32.totalorder %s542_s27, %s647_s0 }
  0x19   : > { %p348_p5 = pnand %p347_p3, %p346_p2  ;;  %p352_p7 = scmp.lt.u32.totalorder %s350_s12, %s345_s3 }
  0x1a   : > { %p354_p13 = scmp.lt.u32.totalorder %s345_s3, %s542_s27 }
  0x1b   : > { %p349_p6 = pneg %p348_p5  ;;  %p353_p10 = por %p352_p7, %p351_p4 }
  0x1d   : > { %p355_p12 = por %p354_p13, %p353_p10 }
  0x1f   : > { %p356_p1 = pnand %p355_p12, %p349_p6 }
  0x21   : > { %359 = shalt.err (!%p356_p1)
}
  0x22   : > { %s360_s16 = scalar_lea.vmem %s544_s29, 128  ;;  %s459_s17 = smov [#allocation2]  }
  0x23   : > { %p361_p2 = scmp.ne.s32.totalorder %s544_s29, %s360_s16  ;;  %s365_s22 = sshll.u32 %s459_s17, 4  ;;  %s366_s22 = int_to_ptr.vmem [resolvable:$false] %s365_s22 }
  0x24   : > { %s367_s23 = scalar_lea.vmem %s366_s22, 256  ;;  %p368_p9 = scmp.lt.s32.totalorder %s544_s29, %s366_s22 }
  0x25   : > { %p363_p5 = pnand %p361_p2, %p347_p3  ;;  %p369_p4 = scmp.lt.s32.totalorder %s367_s23, %s360_s16 }
  0x27   : > { %p364_p11 = pneg %p363_p5  ;;  %p370_p7 = por %p369_p4, %p368_p9 }
  0x29   : > { %p371_p10 = pnand %p370_p7, %p364_p11 }
  0x2b   : > { %374 = shalt.err (!%p371_p10)
}
  0x2c   : > { %s460_s24 = smov 64   ;;  %s461_s25 = smov 4  }
  0x2d   : > { %288 = dma.hbm_to_vmem [thread:$0]  (!%p548_p0), %s542_s27, 128, %s544_s29, %s553_s2, %s460_s24, %s460_s24, %s461_s25  }
  0x2e   : > { %p124_p12 = scmp.lt.s32.totalorder %s457_s11, 3  ;;  %p655_p1 = scmp.ge.s32.totalorder %s457_s11, 1 }
  0x30   : > { %p125_p3 = pnand %p655_p1, %p124_p12 }
  0x31   : > { %s585_s26 = sand.u32 (!%p125_p3), 1, %s441_s7  }
  0x32   : > { %128 = sbr.rel (%p125_p3) target bundleno = 84 (0x54), region = 24  ;;  %s271_s28 = sshll.u32 (!%p125_p3), %s585_s26, 3 }
  0x33   : > { %s131_s3 = scalar_lea.sflag (!%p125_p3), [#allocation3], %s585_s26  ;;  %s134_s4 = scalar_lea.vmem (!%p125_p3), [#allocation2], %s271_s28 }
  0x39   : > { %428 = dma.done.wait (%p520_p8), %s131_s3, 128  }
  0x3a   : > { %430 = vsyncadd (%p520_p8), %s131_s3, 4294967168  ;;  %s272_s27 = sshll.u32 %s585_s26, 2  ;;  %v157_v0 = vlaneseq  ;;  %s280_s2 = sshll.u32 %s449_s9, 6  ;;  %v153_v1 = vld [vmem:[%s134_s4] sm:$0xf] }
  0x3b   : > { %s152_s29 = scalar_lea.vmem [#allocation5], %s272_s27  ;;  %v273_v2 = vld [vmem:[%s134_s4 + $0x4] sm:$0xf]  ;;  %s600_s18 = scalar_lea.hbm %s648_s1, %s280_s2 }
  0x3c   : > { %s179_s30 = sshll.u32 %s152_s29, 4  ;;  %vm159_vm0 = vcmp.lt.s32.totalorder %v157_v0, 512  ;;  %v156_v3 = vmax.f32 %v153_v1, %v273_v2  ;;  %s163_s13 = scalar_lea.sflag [#allocation4], %s585_s26  ;;  %s595_s30 = int_to_ptr.vmem [resolvable:$true] %s179_s30 }
  0x3d   : > { %s375_s15 = scalar_lea.vmem %s595_s30, 64  ;;  %p656_p9 = scmp.ne.s32.totalorder %s652_s19, 0 }
  0x3e   : > { %161 = vst.msk [vmem:[%s152_s29] sm:$0xf] %vm159_vm0, %v156_v3  ;;  %p376_p8 = scmp.ne.s32.totalorder %s595_s30, %s375_s15  ;;  %s462_s9 = smov [#allocation5]  }
  0x3f   : > { %s379_s16 = sshll.u32 %s462_s9, 4  ;;  %s380_s16 = int_to_ptr.vmem [resolvable:$false] %s379_s16 }
  0x40   : > { %p377_p11 = pnand %p376_p8, %p656_p9  ;;  %s381_s17 = scalar_lea.vmem %s380_s16, 128 }
  0x41   : > { %p382_p6 = scmp.lt.s32.totalorder %s595_s30, %s380_s16  ;;  %p383_p13 = scmp.lt.s32.totalorder %s381_s17, %s375_s15 }
  0x42   : > { %p378_p0 = pneg %p377_p11 }
  0x43   : > { %p384_p2 = por %p383_p13, %p382_p6 }
  0x45   : > { %p385_p5 = pnand %p384_p2, %p378_p0 }
  0x47   : > { %388 = shalt.err (!%p385_p5)
}
  0x48   : > { %s389_s22 = scalar_lea.hbm %s600_s18, 64  ;;  %s393_s25 = scalar_lea.hbm %s648_s1, 128 }
  0x49   : > { %p390_p4 = scmp.ne.s32.totalorder %s600_s18, %s389_s22  ;;  %p394_p12 = scmp.lt.u32.totalorder %s600_s18, %s648_s1 }
  0x4a   : > { %p395_p1 = scmp.lt.u32.totalorder %s393_s25, %s389_s22  ;;  %p397_p8 = scmp.lt.u32.totalorder %s389_s22, %s600_s18 }
  0x4b   : > { %p391_p7 = pnand %p390_p4, %p656_p9 }
  0x4c   : > { %p396_p3 = por %p395_p1, %p394_p12 }
  0x4d   : > { %p392_p10 = pneg %p391_p7 }
  0x4e   : > { %p398_p11 = por %p397_p8, %p396_p3 }
  0x50   : > { %p399_p0 = pnand %p398_p11, %p392_p10 }
  0x52   : > { %402 = shalt.err (!%p399_p0)
}
  0x53   : > { %283 = dma.vmem_to_hbm [thread:$0]  (%p656_p9), %s595_s30, 64, %s600_s18, %s163_s13  }
  0x54 PF: > { %s191_s3 = sand.u32 1, %s437_s6   ;;  %p657_p6 = scmp.ne.s32.totalorder %s653_s21, 0 }
  0x55   : > { %p658_p13 = scmp.ge.s32.totalorder %s457_s11, 2  ;;  %s192_s4 = scalar_lea.sflag [#allocation4], %s191_s3 }
  0x57   : > { %p290_p2 = pnand %p658_p13, %p657_p6 }
  0x59   : > { %432 = dma.done.wait (!%p290_p2), %s192_s4, 64  }
  0x5a   : > { %434 = vsyncadd (!%p290_p2), %s192_s4, 4294967232  ;;  %s17_s11 = sadd.s32 1, %s457_s11   ;;  %s659_s6 = smov %s441_s7 }
  0x5b   : > { %p14_p5 = scmp.ge.s32.totalorder %s17_s11, 4   ;;  %s660_s7 = smov %s445_s8 }
  0x5c   : > { %s661_s8 = smov %s529_s20  ;;  %s662_s9 = smov %s453_s10 }
  0x5d   : > { %s663_s10 = smov %s665_s14  ;;  %16 = sbr.rel (!%p14_p5) target bundleno = 6 (0x6), region = 70 }
  0x64   :  { %197 = vsyncpa [#allocation3], 1 }
  0x65   :  { %199 = vsyncpa [#allocation3 + $0x1], 1 }
  0x66   :  { %200 = vsyncpa [#allocation4], 1 }
  0x67   :  { %202 = vsyncpa [#allocation4 + $0x1], 1 }

</bundles_post_ra>
